<compile_context>
chip_gen: v7x
topology: tpu7x:2x2x1
jax: 0.10.0
libtpu: 0.0.40
codegen_flags: <defaults>
</compile_context>

<pallas_src>
import jax
import jax.numpy as jnp
from jax.experimental import pallas as pl
from jax.experimental.pallas import tpu as pltpu

_LANES = 128

# Part-axis semantics for the leading grid axis.
# TODO(synk): on v7x, if xprof shows one TensorCore idle, switch this to
# pltpu.CORE_PARALLEL (and re-verify each core re-zeros its own acc at s == 0).
_PART_AXIS_SEMANTICS = "parallel"


def _cdiv(a, b):
    return -(-a // b)


def _tpu_config():
    """Returns (num_parts, f32-equiv tile bytes, vmem_limit_bytes) per chip gen."""
    # Conservative defaults, safe on any generation.
    parts, tile_bytes_f32, vmem_limit = 1, 2 << 20, 32 << 20
    try:
        vmem_cap = int(pltpu.get_tpu_info().vmem_capacity_bytes)
        if vmem_cap >= (96 << 20):
            # v5e / v6e: 128 MiB VMEM, single TensorCore -> bigger tiles, 1 part.
            parts, tile_bytes_f32, vmem_limit = 1, 4 << 20, 64 << 20
        else:
            # v7x-class: 64 MiB VMEM, 2 TensorCores -> 2 parts, smaller budget.
            parts, tile_bytes_f32, vmem_limit = 2, 2 << 20, 30 << 20
    except Exception:
        pass  # hardware query unavailable -> keep the safe defaults
    return parts, tile_bytes_f32, vmem_limit


def content_loss_ref(x, target):
    d = x.astype(jnp.float32) - target.astype(jnp.float32)
    return jnp.mean(d * d)


def _make_mse_kernel(rows, steps, tile_rows, acc_rows, needs_mask):
    folds = tile_rows // acc_rows

    def kernel(x_ref, t_ref, out_ref, acc_ref):
        p = pl.program_id(0)
        s = pl.program_id(1)

        @pl.when(s == 0)
        def _():
            acc_ref[...] = jnp.zeros_like(acc_ref)

        d = x_ref[...].astype(jnp.float32) - t_ref[...].astype(jnp.float32)
        if needs_mask:
            # Zero rows beyond the true extent (ragged last tile and/or clamped
            # duplicate tiles).  Pure VALU filler in an HBM-bound kernel.
            start = (p * steps + s) * tile_rows
            rid = jax.lax.broadcasted_iota(jnp.int32, (tile_rows, _LANES), 0)
            d = jnp.where(start + rid < rows, d, 0.0)
        sq = d * d

        # Tree-fold the tile into a narrow accumulator: (folds-1) free VALU adds
        # in exchange for folds-x fewer accumulator loads/stores (vst slot is the
        # first to saturate for bf16 on v7x) and a much smaller scratch.
        part = sq[0:acc_rows, :]
        for f in range(1, folds):
            part = part + sq[f * acc_rows:(f + 1) * acc_rows, :]
        acc_ref[...] += part

        @pl.when(s == pl.num_programs(1) - 1)
        def _():
            # Single cross-lane/sublane (XLU) reduction per part, once at the end.
            out_ref[0, 0] = jnp.sum(acc_ref[...])

    return kernel


def _mse_sum_pallas(x2, t2):
    """sum((x2 - t2)^2) over lane-dense (rows, 128) views; f32 accumulation."""
    rows = x2.shape[0]
    itemsize = x2.dtype.itemsize
    parts_cfg, tile_bytes_f32, vmem_limit = _tpu_config()

    # Sublane multiple for the *streamed* dtype (f32: 8, bf16: 16, int8: 32).
    sub = 8 * max(1, 4 // itemsize)
    # Tile rows budgeted against the f32-expanded working set so in-kernel f32
    # temporaries stay bounded regardless of the streamed dtype.
    max_tile_rows = max(sub, (tile_bytes_f32 // (_LANES * 4)) // sub * sub)

    if rows <= max_tile_rows:
        tile_rows = rows            # single block == full array dim (always legal)
    else:
        tile_rows = max_tile_rows   # multiple of `sub`; last block may be ragged

    nblocks = _cdiv(rows, tile_rows)
    parts = min(parts_cfg, nblocks)
    steps = _cdiv(nblocks, parts)
    needs_clamp = parts * steps != nblocks          # duplicate trailing grid cells
    needs_mask = parts * steps * tile_rows != rows  # any rows to zero out

    # Narrow f32 accumulator (folds-x fewer acc loads/stores than tile-shaped).
    acc_rows = tile_rows
    if tile_rows % 8 == 0:
        for f in (8, 4, 2):
            if tile_rows % (8 * f) == 0:
                acc_rows = tile_rows // f
                break

    if needs_clamp:
        # Clamp so no DMA is ever fully out of bounds; the duplicate block's
        # contribution is zeroed by the in-kernel row mask.
        in_map = lambda p, s: (jnp.minimum(p * steps + s, nblocks - 1), 0)  # noqa: E731
    else:
        in_map = lambda p, s: (p * steps + s, 0)  # noqa: E731

    kernel = _make_mse_kernel(rows, steps, tile_rows, acc_rows, needs_mask)

    # TODO(synk): sweep pipeline_mode=pl.Buffered(3) on the two input specs on
    # real hardware; keep only if it measures faster.
    partials = pl.pallas_call(
        kernel,
        out_shape=jax.ShapeDtypeStruct((parts, 1), jnp.float32),
        grid_spec=pltpu.PrefetchScalarGridSpec(
            num_scalar_prefetch=0,
            grid=(parts, steps),
            in_specs=[
                pl.BlockSpec((tile_rows, _LANES), in_map),
                pl.BlockSpec((tile_rows, _LANES), in_map),
            ],
            out_specs=pl.BlockSpec(
                (1, 1), lambda p, s: (p, 0), memory_space=pltpu.SMEM
            ),
            scratch_shapes=[pltpu.VMEM((acc_rows, _LANES), jnp.float32)],
        ),
        compiler_params=pltpu.CompilerParams(
            dimension_semantics=(_PART_AXIS_SEMANTICS, "arbitrary"),
            vmem_limit_bytes=int(vmem_limit),
        ),
        cost_estimate=pl.CostEstimate(
            flops=3 * rows * _LANES,
            transcendentals=0,
            bytes_accessed=2 * rows * _LANES * itemsize + parts * 4,
        ),
    )(x2, t2)

    return jnp.sum(partials)


def content_loss_forward(x, target, *, force_pallas=False, min_pallas_bytes=1 << 20):
    """Mirrors ContentLoss.forward: returns (input, mse_loss_scalar)."""
    assert x.shape == target.shape, "input/target shape mismatch"
    total = x.size
    if total == 0:
        return x, jnp.float32(0.0)

    # Tiny feature maps: fixed pallas_call/pipeline setup cost exceeds the whole
    # reduction; let XLA's fused reduction handle it.
    if not force_pallas and total * x.dtype.itemsize < min_pallas_bytes:
        return x, content_loss_ref(x, target)

    xf = x.reshape(-1)
    tf = target.reshape(-1)

    # 128-aligned prefix streams through Pallas (free reshape of a contiguous
    # array, no jnp.pad HBM copy); the < 128-element ragged tail is a
    # negligible XLA reduction.
    aligned = (total // _LANES) * _LANES
    if aligned == 0:
        return x, content_loss_ref(x, target)

    sq_sum = _mse_sum_pallas(
        xf[:aligned].reshape(aligned // _LANES, _LANES),
        tf[:aligned].reshape(aligned // _LANES, _LANES),
    )
    if aligned != total:
        dt = xf[aligned:].astype(jnp.float32) - tf[aligned:].astype(jnp.float32)
        sq_sum = sq_sum + jnp.sum(dt * dt)

    # Python-float 1/total keeps the divisor exact even for counts > 2^24.
    return x, sq_sum * (1.0 / total)


def make_content_loss(target):
    """Mirrors `ContentLoss(target)`: the returned forward closes over the
    constant target, so its flatten/prefix-split is const-folded once per
    compile instead of being per-call layout work."""
    def forward(x):
        return content_loss_forward(x, target)
    return forward


if __name__ == "__main__":
    key = jax.random.PRNGKey(0)
    k1, k2, k3, k4, k5, k6 = jax.random.split(key, 6)

    # Case 1: small NCHW feature map, forced through the Pallas path.
    x = jax.random.normal(k1, (2, 4, 16, 16), dtype=jnp.float32)
    target = jax.random.normal(k2, (2, 4, 16, 16), dtype=jnp.float32)
    out, loss = content_loss_forward(x, target, force_pallas=True)
    out = jax.block_until_ready(out)
    loss = jax.block_until_ready(loss)
    ref = content_loss_ref(x, target)
    assert out.shape == x.shape and bool(jnp.all(out == x)), "pass-through mismatch"
    assert jnp.allclose(loss, ref, rtol=1e-5, atol=1e-6), (loss, ref)

    # Case 2: total not divisible by 128 -> aligned Pallas prefix + XLA tail.
    xp = jax.random.normal(k3, (1, 3, 17, 19), dtype=jnp.float32)
    tp = jax.random.normal(k4, (1, 3, 17, 19), dtype=jnp.float32)
    _, loss2 = content_loss_forward(xp, tp, force_pallas=True)
    loss2 = jax.block_until_ready(loss2)
    ref2 = content_loss_ref(xp, tp)
    assert jnp.allclose(loss2, ref2, rtol=1e-5, atol=1e-6), (loss2, ref2)

    # Case 3: bf16 streaming (halves HBM bytes), f32 accumulation in-kernel.
    xb = x.astype(jnp.bfloat16)
    tb = target.astype(jnp.bfloat16)
    _, loss3 = content_loss_forward(xb, tb, force_pallas=True)
    loss3 = jax.block_until_ready(loss3)
    ref3 = content_loss_ref(xb, tb)
    assert jnp.allclose(loss3, ref3, rtol=1e-3, atol=1e-4), (loss3, ref3)

    # Case 4: multi-tile input with a ragged last tile (exercises the in-kernel
    # mask, the multi-step accumulate and the XLA tail) via the module-style API.
    xl = jax.random.normal(k5, (1, 8, 370, 371), dtype=jnp.float32)
    tl = jax.random.normal(k6, (1, 8, 370, 371), dtype=jnp.float32)
    fwd = make_content_loss(tl)
    out4, loss4 = fwd(xl)
    out4 = jax.block_until_ready(out4)
    loss4 = jax.block_until_ready(loss4)
    ref4 = content_loss_ref(xl, tl)
    assert jnp.allclose(loss4, ref4, rtol=1e-4, atol=1e-5), (loss4, ref4)

    print("KERNEL_OK")
</pallas_src>

<mosaic_0001>
module attributes {stable_mosaic.version = 11 : i64} {
  func.func @kernel(%arg0: i32, %arg1: i32, %arg2: memref<16x128xf32, #tpu.memory_space<vmem>>, %arg3: memref<16x128xf32, #tpu.memory_space<vmem>>, %arg4: memref<1x1xf32, #tpu.memory_space<smem>>, %arg5: memref<8x128xf32, #tpu.memory_space<vmem>>) attributes {dimension_semantics = [#tpu.dimension_semantics<parallel>, #tpu.dimension_semantics<arbitrary>], iteration_bounds = array<i64: 1, 1>, scalar_prefetch = 0 : i64, scratch_operands = 1 : i64, tpu.core_type = #tpu.core_type<tc>, window_params = [{transform_indices = @transform_0, window_bounds = array<i64: 16, 128>}, {transform_indices = @transform_1, window_bounds = array<i64: 16, 128>}, {transform_indices = @transform_2, window_bounds = array<i64: 1, 1>}]} {
    %c0_i32 = arith.constant 0 : i32
    %0 = arith.cmpi eq, %arg1, %c0_i32 : i32
    %1 = arith.extui %0 : i1 to i32
    %c0_i32_0 = arith.constant 0 : i32
    %2 = arith.cmpi ne, %1, %c0_i32_0 : i32
    scf.if %2 {
      %cst = arith.constant 0.000000e+00 : f32
      %16 = vector.broadcast %cst : f32 to vector<8x128xf32>
      %c0_10 = arith.constant 0 : index
      %c0_11 = arith.constant 0 : index
      %17 = vector.load %arg5[%c0_10, %c0_11] : memref<8x128xf32, #tpu.memory_space<vmem>>, vector<8x128xf32>
      tpu.vector_store %arg5[%c0_10, %c0_11], %16 {strides = array<i32>} : memref<8x128xf32, #tpu.memory_space<vmem>>, vector<8x128xf32>,
    } else {
    }
    %c0 = arith.constant 0 : index
    %c0_1 = arith.constant 0 : index
    %3 = vector.load %arg2[%c0, %c0_1] : memref<16x128xf32, #tpu.memory_space<vmem>>, vector<16x128xf32>
    %c0_2 = arith.constant 0 : index
    %c0_3 = arith.constant 0 : index
    %4 = vector.load %arg3[%c0_2, %c0_3] : memref<16x128xf32, #tpu.memory_space<vmem>>, vector<16x128xf32>
    %5 = arith.subf %3, %4 : vector<16x128xf32>
    %6 = arith.mulf %5, %5 : vector<16x128xf32>
    %7 = vector.extract_strided_slice %6 {offsets = [0, 0], sizes = [8, 128], strides = [1, 1]} : vector<16x128xf32> to vector<8x128xf32>
    %8 = vector.extract_strided_slice %6 {offsets = [8, 0], sizes = [8, 128], strides = [1, 1]} : vector<16x128xf32> to vector<8x128xf32>
    %9 = arith.addf %7, %8 : vector<8x128xf32>
    %c0_4 = arith.constant 0 : index
    %c0_5 = arith.constant 0 : index
    %10 = vector.load %arg5[%c0_4, %c0_5] : memref<8x128xf32, #tpu.memory_space<vmem>>, vector<8x128xf32>
    %11 = arith.addf %10, %9 : vector<8x128xf32>
    %c0_6 = arith.constant 0 : index
    %c0_7 = arith.constant 0 : index
    %12 = vector.load %arg5[%c0_6, %c0_7] : memref<8x128xf32, #tpu.memory_space<vmem>>, vector<8x128xf32>
    tpu.vector_store %arg5[%c0_6, %c0_7], %11 {strides = array<i32>} : memref<8x128xf32, #tpu.memory_space<vmem>>, vector<8x128xf32>,
    %c0_i32_8 = arith.constant 0 : i32
    %13 = arith.cmpi eq, %arg1, %c0_i32_8 : i32
    %14 = arith.extui %13 : i1 to i32
    %c0_i32_9 = arith.constant 0 : i32
    %15 = arith.cmpi ne, %14, %c0_i32_9 : i32
    scf.if %15 {
      %c0_10 = arith.constant 0 : index
      %c0_11 = arith.constant 0 : index
      %16 = vector.load %arg5[%c0_10, %c0_11] : memref<8x128xf32, #tpu.memory_space<vmem>>, vector<8x128xf32>
      %17 = vector.shape_cast %16 : vector<8x128xf32> to vector<1x8x128xf32>
      %cst = arith.constant dense<0.000000e+00> : vector<1xf32>
      %18 = vector.multi_reduction <add>, %17, %cst [1, 2] : vector<1x8x128xf32> to vector<1xf32>
      %19 = vector.shape_cast %18 : vector<1xf32> to vector<1x1x1xf32>
      %20 = vector.extract %19[0, 0, 0] : f32 from vector<1x1x1xf32>
      %c0_12 = arith.constant 0 : index
      %c0_13 = arith.constant 0 : index
      %21 = memref.load %arg4[%c0_12, %c0_13] : memref<1x1xf32, #tpu.memory_space<smem>>
      memref.store %20, %arg4[%c0_12, %c0_13] : memref<1x1xf32, #tpu.memory_space<smem>>
    } else {
    }
    return
  }
  func.func @transform_0(%arg0: i32, %arg1: i32) -> (i32, i32) {
    %c1_i32 = arith.constant 1 : i32
    %0 = arith.muli %arg0, %c1_i32 : i32
    %1 = arith.addi %0, %arg1 : i32
    %c0_i32 = arith.constant 0 : i32
    %c0_i32_0 = arith.constant 0 : i32
    return %1, %c0_i32 : i32, i32
  }
  func.func @transform_1(%arg0: i32, %arg1: i32) -> (i32, i32) {
    %c1_i32 = arith.constant 1 : i32
    %0 = arith.muli %arg0, %c1_i32 : i32
    %1 = arith.addi %0, %arg1 : i32
    %c0_i32 = arith.constant 0 : i32
    %c0_i32_0 = arith.constant 0 : i32
    return %1, %c0_i32 : i32, i32
  }
  func.func @transform_2(%arg0: i32, %arg1: i32) -> (i32, i32) {
    %c0_i32 = arith.constant 0 : i32
    %c0_i32_0 = arith.constant 0 : i32
    return %arg0, %c0_i32 : i32, i32
  }
}

</mosaic_0001>

<bundles_post_ra>
// kernel: tpu_custom_call.1
= control target key start
LH: loop header
LB: loop body
LE: loop exit
PB: predicated region body
PF: predicated region fallthrough
CT: control target
= control target key end

     0   :  { %7 = vsyncpa [#allocation4], 0  ;;  %s222_s0 = inlined_call_operand.hbm [shape: f32[16,128], index: 0, kind: input, shape index: {}]   ;;  %s223_s1 = inlined_call_operand.hbm [shape: f32[16,128], index: 1, kind: input, shape index: {}]   ;;  %s224_s2 = inlined_call_operand.hbm [shape: f32[1,1], index: 2, kind: output, shape index: {}]  }
   0x1   :  { %8 = vsyncpa [#allocation7], 0 }
   0x2   :  { %9 = vsyncpa [#allocation5], 0  ;;  %s166_s9 = smov [#allocation3]   ;;  %s106_s13 = scalar_lea.hbm %s222_s0, 256 }
   0x3   :  { %s19_s10 = sshll.u32 %s166_s9, 4  ;;  %p107_p0 = scmp.ne.s32.totalorder %s222_s0, %s106_s13  ;;  %s20_s10 = int_to_ptr.vmem [resolvable:$true] %s19_s10 }
   0x4   :  { %p110_p1 = scmp.lt.u32.totalorder %s106_s13, %s222_s0 }
   0x6   :  { %p112_p2 = pnand %p110_p1, %p107_p0 }
   0x8   :  { %115 = shalt.err (!%p112_p2)
}
   0x9   :  { %s116_s18 = scalar_lea.vmem %s20_s10, 256  ;;  %p121_p4 = scmp.lt.s32.totalorder %s20_s10, %s20_s10 }
   0xa   :  { %p117_p3 = scmp.ne.s32.totalorder %s20_s10, %s116_s18  ;;  %p122_p5 = scmp.lt.s32.totalorder %s116_s18, %s116_s18 }
   0xc   :  { %p123_p6 = por %p122_p5, %p121_p4 }
   0xe   :  { %p124_p7 = pnand %p123_p6, %p117_p3 }
  0x10   :  { %127 = shalt.err (!%p124_p7)
}
  0x11   :  { %s167_s19 = smov 128   ;;  %s168_s20 = smov 8  }
  0x12   :  { %25 = dma.hbm_to_vmem [thread:$0]  %s222_s0, 256, %s20_s10, [#allocation4], %s167_s19, %s167_s19, %s168_s20  }
  0x13   :  { %s169_s23 = smov [#allocation6]   ;;  %s128_s27 = scalar_lea.hbm %s223_s1, 256 }
  0x14   :  { %s35_s24 = sshll.u32 %s169_s23, 4  ;;  %p129_p8 = scmp.ne.s32.totalorder %s223_s1, %s128_s27  ;;  %s36_s24 = int_to_ptr.vmem [resolvable:$true] %s35_s24 }
  0x15   :  { %p132_p9 = scmp.lt.u32.totalorder %s128_s27, %s223_s1 }
  0x17   :  { %p134_p10 = pnand %p132_p9, %p129_p8 }
  0x19   :  { %137 = shalt.err (!%p134_p10)
}
  0x1a   :  { %s138_s4 = scalar_lea.vmem %s36_s24, 256  ;;  %p143_p12 = scmp.lt.s32.totalorder %s36_s24, %s36_s24 }
  0x1b   :  { %p139_p11 = scmp.ne.s32.totalorder %s36_s24, %s138_s4  ;;  %p144_p13 = scmp.lt.s32.totalorder %s138_s4, %s138_s4 }
  0x1d   :  { %p145_p0 = por %p144_p13, %p143_p12 }
  0x1f   :  { %p146_p1 = pnand %p145_p0, %p139_p11 }
  0x21   :  { %149 = shalt.err (!%p146_p1)
}
  0x22   :  { %41 = dma.hbm_to_vmem [thread:$0]  %s223_s1, 256, %s36_s24, [#allocation7], %s167_s19, %s167_s19, %s168_s20  }
  0x23   :  { %160 = dma.done.wait [#allocation4], 256  }
  0x24   :  { %161 = vsyncadd [#allocation4], 4294967040 }
  0x25   :  { %162 = dma.done.wait [#allocation7], 256  }
  0x26   :  { %163 = vsyncadd [#allocation7], 4294967040  ;;  %v57_v0 = vld [vmem:[#allocation3] sm:$0xff]  ;;  %v58_v1 = vld [vmem:[#allocation3 + $0x8] sm:$0xff]  ;;  %s150_s8 = scalar_lea.hbm %s224_s2, 16 }
  0x27   :  { %v59_v2 = vld [vmem:[#allocation6] sm:$0xff]  ;;  %v60_v3 = vld [vmem:[#allocation6 + $0x8] sm:$0xff]  ;;  %p151_p2 = scmp.ne.s32.totalorder %s224_s2, %s150_s8  ;;  %p154_p3 = scmp.lt.u32.totalorder %s150_s8, %s224_s2 }
  0x28   :  { %v61_v4 = vsub.f32 %v57_v0, %v59_v2  ;;  %v62_v5 = vsub.f32 %v58_v1, %v60_v3 }
  0x29   :  { %p156_p4 = pnand %p154_p3, %p151_p2 }
  0x2a   :  { %v63_v6 = vmul.f32 %v61_v4, %v61_v4  ;;  %v64_v7 = vmul.f32 %v62_v5, %v62_v5 }
  0x2c   :  { %v65_v8 = vadd.f32 %v64_v7, %v63_v6 }
  0x2e   :  { %73 = vadd.xlane.f32.xlu0 %v65_v8 }
  0xbb   :  { %v74_v9 = vpop.xlane.xlu0 %73 }
  0xbc   :  { %v75_v10 = vrot.slane %v74_v9, 4 }
  0xbe   :  { %v76_v11 = vadd.f32 %v75_v10, %v74_v9 }
  0xc0   :  { %v77_v12 = vrot.slane %v76_v11, 2 }
  0xc2   :  { %v78_v13 = vadd.f32 %v77_v12, %v76_v11 }
  0xc4   :  { %v79_v14 = vrot.slane %v78_v13, 1 }
  0xc6   :  { %v80_v15 = vadd.f32 %v79_v14, %v78_v13 }
  0xc8   :  { %99 = vpush %v80_v15 }
  0xf9   :  { %s100_s1 = spop %99 }
  0xfa   :  { %83 = sst [smem:[#allocation8]] %s100_s1 }
  0xfb   :  { %159 = shalt.err (!%p156_p4)
}
  0xfc   :  { %s170_s13 = smov [#allocation8]  }
  0xfd   :  { %91 = dma.smem_to_hbm %s170_s13, 16, %s224_s2, [#allocation5]  }
  0xfe   :  { %164 = dma.done.wait [#allocation5], 16  }
  0xff   :  { %165 = vsyncadd [#allocation5], 4294967280 }
 0x100   :  { %95 = sfence }
 0x101   :  { %96 = vsyncpa [#allocation4], 1 }
 0x102   :  { %97 = vsyncpa [#allocation7], 1 }
 0x103   :  { %98 = vsyncpa [#allocation5], 1 }

</bundles_post_ra>
